<compile_context>
chip_gen: v7x
topology: tpu7x:2x2x1
jax: 0.10.0
libtpu: 0.0.40
codegen_flags: <defaults>
</compile_context>

<pallas_src>
import functools

import jax
import jax.numpy as jnp
from jax import lax
from jax.experimental import pallas as pl
from jax.experimental.pallas import tpu as pltpu

EPS = 1e-07
# Sentinel used to zero out masked (out-of-bounds / redundant) rows with a single
# select: in float32, ulp(1e30) ~ 7.5e22 >> c, so (PAD + eps) == (PAD + c)
# bit-exactly and log(PAD+eps) - log(PAD+c) == 0.  Do NOT change _PAD or the
# accumulate dtype without re-checking this absorption property.
_PAD = 1e30


def _nce_bulk_kernel(x_ref, o_ref, acc_ref, *, c, batch, tb, spp, acc_sub):
    ci = pl.program_id(0)           # partial (TensorCore) index
    ii = pl.program_id(1)           # step within this partial
    nsteps = pl.num_programs(1)

    @pl.when(ii == 0)
    def _init():
        acc_ref[...] = jnp.zeros_like(acc_ref)

    # Nominal (un-clamped) global block index -> first row covered by this step.
    # Redundant steps (clamped in the index_map) get row0 >= batch -> fully masked.
    row0 = (ci * spp + ii) * tb

    vals = x_ref[...].astype(jnp.float32)
    rows = row0 + lax.broadcasted_iota(jnp.int32, vals.shape, 0)
    vals = jnp.where(rows < batch, vals, jnp.float32(_PAD))

    # Bulk term: exact for the negative columns; positive column is fixed up in
    # the wrapper.  Masked rows contribute exactly 0 (see _PAD note above).
    terms = jnp.log(vals + jnp.float32(EPS)) - jnp.log(vals + jnp.float32(c))

    # Collapse the (tb, D) tile onto an (acc_sub, D) accumulator with pure VPU
    # adds (acc_sub/8 independent vreg chains for ILP); the single cross-lane /
    # cross-sublane reduce is paid once, in the wrapper.
    acc_ref[...] += jnp.sum(terms.reshape(-1, acc_sub, terms.shape[-1]), axis=0)

    @pl.when(ii == nsteps - 1)
    def _finalize():
        o_ref[...] = acc_ref[...][None]


def _budgets():
    """(target_block_bytes, vmem_limit_bytes), tuned per TPU generation."""
    try:
        cap = int(pltpu.get_tpu_info().vmem_capacity_bytes)
    except Exception:
        cap = 64 << 20                      # assume the smallest (v7x) VMEM
    if cap >= (96 << 20):                   # v5e / v6e: 128 MiB physical VMEM
        return 16 << 20, 64 << 20
    return 8 << 20, 40 << 20                # v7x: 64 MiB physical VMEM per core


def nce_criterion(x, targets=None, *, index_size, block_bytes=None):
    """Pallas TPU implementation of NCECriterion.forward.  Returns shape (1,)."""
    del targets  # unused, matches the reference module
    B, D = x.shape
    K = D - 1
    c = float(EPS) + float(K) / float(index_size)
    itemsize = x.dtype.itemsize

    if block_bytes is None:
        block_bytes, vmem_limit = _budgets()
    else:
        vmem_limit = max(32 << 20, min(64 << 20, 2 * block_bytes + (8 << 20)))

    # ---- row tiling of the natural (B, D) layout (no host-side copy) --------
    # Pick the step count first, then the row tile, to minimise padded rows.
    tb_max = max(8, (block_bytes // max(1, D * itemsize)) // 8 * 8)
    nblocks = -(-B // tb_max)
    tb = ((-(-B // nblocks) + 7) // 8) * 8
    nblocks = -(-B // tb)
    vmem_limit = max(vmem_limit, 2 * tb * D * itemsize + (4 << 20))

    acc_sub = 32 if (tb >= 32 and tb % 32 == 0) else 8

    # Split the row blocks across two partials (one per TensorCore on v7x).
    num_partials = 2 if nblocks >= 2 else 1
    spp = -(-nblocks // num_partials)       # steps per partial
    last_block = nblocks - 1

    kernel = functools.partial(
        _nce_bulk_kernel, c=c, batch=B, tb=tb, spp=spp, acc_sub=acc_sub)

    partials = pl.pallas_call(
        kernel,
        out_shape=jax.ShapeDtypeStruct((num_partials, acc_sub, D), jnp.float32),
        grid_spec=pltpu.PrefetchScalarGridSpec(
            num_scalar_prefetch=0,
            grid=(num_partials, spp),
            in_specs=[
                # Clamp redundant trailing steps onto the last real block; the
                # kernel masks them to zero via the un-clamped row index.
                pl.BlockSpec(
                    (tb, D),
                    lambda ci, ii: (jnp.minimum(ci * spp + ii, last_block), 0)),
            ],
            out_specs=pl.BlockSpec((1, acc_sub, D), lambda ci, ii: (ci, 0, 0)),
            scratch_shapes=[pltpu.VMEM((acc_sub, D), jnp.float32)],
        ),
        compiler_params=pltpu.CompilerParams(
            dimension_semantics=("parallel", "arbitrary"),
            vmem_limit_bytes=vmem_limit,
        ),
        cost_estimate=pl.CostEstimate(
            flops=7 * B * D,
            transcendentals=2 * B * D,
            bytes_accessed=B * D * itemsize + num_partials * acc_sub * D * 4,
        ),
    )(x)

    # Positive-column correction + final reduce: tiny O(B) work in plain JAX.
    pos = x[:, 0].astype(jnp.float32)
    fixup = jnp.sum(jnp.log(pos) - jnp.log(pos + jnp.float32(EPS)))
    total = jnp.sum(partials) + fixup
    return (-total / jnp.float32(B)).reshape((1,))


def _reference(x, index_size):
    # Pure-JAX reference mirroring the PyTorch code, for a correctness check.
    B, D = x.shape
    K = D - 1
    c = EPS + K / float(index_size)
    xf = x.astype(jnp.float32)
    pos = xf[:, 0]
    sum_pos = jnp.sum(jnp.log(pos / (pos + c)))
    sum_neg = jnp.sum(jnp.log(1.0 - (K / float(index_size)) / (xf[:, 1:] + c)))
    return (-(sum_pos + sum_neg) / B).reshape((1,))


if __name__ == "__main__":
    index_size = 4096   # size of the instance-discrimination memory bank
    key = jax.random.PRNGKey(0)
    k1, k2 = jax.random.split(key)

    # Case 1: small canonical shape, single block, default tiling.
    B1, D1 = 8, 16      # batch=8, K=15 negatives + 1 positive
    x1 = jax.random.uniform(k1, (B1, D1), dtype=jnp.float32, minval=1e-4, maxval=1.0)
    t1 = jnp.zeros((B1,), dtype=jnp.int32)            # unused, API parity only
    out1 = jax.block_until_ready(nce_criterion(x1, t1, index_size=index_size))
    ref1 = _reference(x1, index_size)
    assert out1.shape == (1,)
    assert jnp.allclose(out1, ref1, rtol=1e-4, atol=1e-5), (out1, ref1)

    # Case 2: forced tiny tiles -> multi-block, ragged row tail, dual-partial
    # split with one redundant (clamped + masked) step.  Exercises every path.
    B2, D2 = 40, 16
    x2 = jax.random.uniform(k2, (B2, D2), dtype=jnp.float32, minval=1e-4, maxval=1.0)
    out2 = jax.block_until_ready(
        nce_criterion(x2, None, index_size=index_size, block_bytes=1024))
    ref2 = _reference(x2, index_size)
    assert out2.shape == (1,)
    assert jnp.allclose(out2, ref2, rtol=1e-4, atol=1e-5), (out2, ref2)

    print("KERNEL_OK")
</pallas_src>

<mosaic_0001>
module attributes {stable_mosaic.version = 11 : i64} {
  func.func @_nce_bulk_kernel(%arg0: i32, %arg1: i32, %arg2: memref<8x16xf32, #tpu.memory_space<vmem>>, %arg3: memref<1x8x16xf32, #tpu.memory_space<vmem>>, %arg4: memref<8x16xf32, #tpu.memory_space<vmem>>) attributes {dimension_semantics = [#tpu.dimension_semantics<parallel>, #tpu.dimension_semantics<arbitrary>], iteration_bounds = array<i64: 1, 1>, scalar_prefetch = 0 : i64, scratch_operands = 1 : i64, tpu.core_type = #tpu.core_type<tc>, window_params = [{transform_indices = @transform_0, window_bounds = array<i64: 8, 16>}, {transform_indices = @transform_1, window_bounds = array<i64: 1, 8, 16>}]} {
    %c0_i32 = arith.constant 0 : i32
    %0 = arith.cmpi eq, %arg1, %c0_i32 : i32
    %1 = arith.extui %0 : i1 to i32
    %c0_i32_0 = arith.constant 0 : i32
    %2 = arith.cmpi ne, %1, %c0_i32_0 : i32
    scf.if %2 {
      %cst_12 = arith.constant 0.000000e+00 : f32
      %29 = vector.broadcast %cst_12 : f32 to vector<8x16xf32>
      %c0_13 = arith.constant 0 : index
      %c0_14 = arith.constant 0 : index
      %30 = vector.load %arg4[%c0_13, %c0_14] : memref<8x16xf32, #tpu.memory_space<vmem>>, vector<8x16xf32>
      tpu.vector_store %arg4[%c0_13, %c0_14], %29 {strides = array<i32>} : memref<8x16xf32, #tpu.memory_space<vmem>>, vector<8x16xf32>,
    } else {
    }
    %c1_i32 = arith.constant 1 : i32
    %3 = arith.muli %arg0, %c1_i32 : i32
    %4 = arith.addi %3, %arg1 : i32
    %c8_i32 = arith.constant 8 : i32
    %5 = arith.muli %4, %c8_i32 : i32
    %c0 = arith.constant 0 : index
    %c0_1 = arith.constant 0 : index
    %6 = vector.load %arg2[%c0, %c0_1] : memref<8x16xf32, #tpu.memory_space<vmem>>, vector<8x16xf32>
    %7 = tpu.iota {dimensions = array<i32: 0>} : vector<8x16xi32>
    %8 = vector.broadcast %5 : i32 to vector<8x16xi32>
    %9 = arith.addi %8, %7 : vector<8x16xi32>
    %c8_i32_2 = arith.constant 8 : i32
    %10 = vector.broadcast %c8_i32_2 : i32 to vector<8x16xi32>
    %11 = arith.cmpi slt, %9, %10 : vector<8x16xi32>
    %cst = arith.constant 1.000000e+30 : f32
    %12 = vector.broadcast %cst : f32 to vector<8x16xf32>
    %13 = arith.select %11, %6, %12 : vector<8x16xi1>, vector<8x16xf32>
    %cst_3 = arith.constant 1.000000e-07 : f32
    %14 = vector.broadcast %cst_3 : f32 to vector<8x16xf32>
    %15 = arith.addf %13, %14 : vector<8x16xf32>
    %16 = math.log %15 : vector<8x16xf32>
    %cst_4 = arith.constant 0.00366220926 : f32
    %17 = vector.broadcast %cst_4 : f32 to vector<8x16xf32>
    %18 = arith.addf %13, %17 : vector<8x16xf32>
    %19 = math.log %18 : vector<8x16xf32>
    %20 = arith.subf %16, %19 : vector<8x16xf32>
    %c0_5 = arith.constant 0 : index
    %c0_6 = arith.constant 0 : index
    %21 = vector.load %arg4[%c0_5, %c0_6] : memref<8x16xf32, #tpu.memory_space<vmem>>, vector<8x16xf32>
    %22 = vector.shape_cast %20 : vector<8x16xf32> to vector<1x8x16xf32>
    %cst_7 = arith.constant dense<0.000000e+00> : vector<8x16xf32>
    %23 = vector.multi_reduction <add>, %22, %cst_7 [0] : vector<1x8x16xf32> to vector<8x16xf32>
    %24 = arith.addf %21, %23 : vector<8x16xf32>
    %c0_8 = arith.constant 0 : index
    %c0_9 = arith.constant 0 : index
    %25 = vector.load %arg4[%c0_8, %c0_9] : memref<8x16xf32, #tpu.memory_space<vmem>>, vector<8x16xf32>
    tpu.vector_store %arg4[%c0_8, %c0_9], %24 {strides = array<i32>} : memref<8x16xf32, #tpu.memory_space<vmem>>, vector<8x16xf32>,
    %c0_i32_10 = arith.constant 0 : i32
    %26 = arith.cmpi eq, %arg1, %c0_i32_10 : i32
    %27 = arith.extui %26 : i1 to i32
    %c0_i32_11 = arith.constant 0 : i32
    %28 = arith.cmpi ne, %27, %c0_i32_11 : i32
    scf.if %28 {
      %c0_12 = arith.constant 0 : index
      %c0_13 = arith.constant 0 : index
      %29 = vector.load %arg4[%c0_12, %c0_13] : memref<8x16xf32, #tpu.memory_space<vmem>>, vector<8x16xf32>
      %30 = vector.shape_cast %29 : vector<8x16xf32> to vector<1x8x16xf32>
      %c0_14 = arith.constant 0 : index
      %c0_15 = arith.constant 0 : index
      %c0_16 = arith.constant 0 : index
      %31 = vector.load %arg3[%c0_14, %c0_15, %c0_16] : memref<1x8x16xf32, #tpu.memory_space<vmem>>, vector<1x8x16xf32>
      tpu.vector_store %arg3[%c0_14, %c0_15, %c0_16], %30 {strides = array<i32>} : memref<1x8x16xf32, #tpu.memory_space<vmem>>, vector<1x8x16xf32>,
    } else {
    }
    return
  }
  func.func @transform_0(%arg0: i32, %arg1: i32) -> (i32, i32) {
    %c1_i32 = arith.constant 1 : i32
    %0 = arith.muli %arg0, %c1_i32 : i32
    %1 = arith.addi %0, %arg1 : i32
    %c0_i32 = arith.constant 0 : i32
    %2 = arith.minsi %1, %c0_i32 : i32
    %c0_i32_0 = arith.constant 0 : i32
    %c0_i32_1 = arith.constant 0 : i32
    return %2, %c0_i32_0 : i32, i32
  }
  func.func @transform_1(%arg0: i32, %arg1: i32) -> (i32, i32, i32) {
    %c0_i32 = arith.constant 0 : i32
    %c0_i32_0 = arith.constant 0 : i32
    %c0_i32_1 = arith.constant 0 : i32
    return %arg0, %c0_i32, %c0_i32_0 : i32, i32, i32
  }
}

</mosaic_0001>

<bundles_post_ra>
// kernel: tpu_custom_call.1
= control target key start
LH: loop header
LB: loop body
LE: loop exit
PB: predicated region body
PF: predicated region fallthrough
CT: control target
= control target key end

     0   :  { %6 = vsyncpa [#allocation4], 0  ;;  %s173_s0 = inlined_call_operand.hbm [shape: f32[8,16], index: 0, kind: input, shape index: {}]   ;;  %s174_s1 = inlined_call_operand.hbm [shape: f32[1,8,16], index: 1, kind: output, shape index: {}]  }
   0x1   :  { %7 = vsyncpa [#allocation5], 0  ;;  %s133_s6 = smov [#allocation3]   ;;  %s85_s10 = scalar_lea.hbm %s173_s0, 128 }
   0x2   :  { %s19_s7 = sshll.u32 %s133_s6, 4  ;;  %p86_p0 = scmp.ne.s32.totalorder %s173_s0, %s85_s10  ;;  %s20_s7 = int_to_ptr.vmem [resolvable:$true] %s19_s7 }
   0x3   :  { %p89_p1 = scmp.lt.u32.totalorder %s85_s10, %s173_s0 }
   0x5   :  { %p91_p2 = pnand %p89_p1, %p86_p0 }
   0x7   :  { %94 = shalt.err (!%p91_p2)
}
   0x8   :  { %s95_s15 = scalar_lea.vmem %s20_s7, 128  ;;  %p100_p4 = scmp.lt.s32.totalorder %s20_s7, %s20_s7 }
   0x9   :  { %p96_p3 = scmp.ne.s32.totalorder %s20_s7, %s95_s15  ;;  %p101_p5 = scmp.lt.s32.totalorder %s95_s15, %s95_s15 }
   0xb   :  { %p102_p6 = por %p101_p5, %p100_p4 }
   0xd   :  { %p103_p7 = pnand %p102_p6, %p96_p3 }
   0xf   :  { %106 = shalt.err (!%p103_p7)
}
  0x10   :  { %22 = dma.hbm_to_vmem [thread:$0]  %s173_s0, 128, %s20_s7, [#allocation4]  }
  0x11   :  { %129 = dma.done.wait [#allocation4], 128  }
  0x12   :  { %130 = vsyncadd [#allocation4], 4294967168  ;;  %vm33_vm0 = vcmask 130048   ;;  %v134_v0 = vmov 0.0   ;;  %v37_v1 = vld [vmem:[#allocation3] sm:$0xff]  ;;  %s135_s0 = smov [#allocation6]  }
  0x13   :  { %34 = vst.msk [vmem:[#allocation2] sm:$0xff] %vm33_vm0, %v134_v0  ;;  %v44_v2 = vadd.f32 1e-07, %v37_v1  ;;  %v47_v3 = vadd.f32 0.0036622093, %v37_v1  ;;  %s67_s18 = sshll.u32 %s135_s0, 4  ;;  %s68_s18 = int_to_ptr.vmem [resolvable:$true] %s67_s18 }
  0x14   :  { %s107_s19 = scalar_lea.vmem %s68_s18, 128  ;;  %p112_p9 = scmp.lt.s32.totalorder %s68_s18, %s68_s18 }
  0x15   :  { %81 = vlog2.f32 %v44_v2  ;;  %p108_p8 = scmp.ne.s32.totalorder %s68_s18, %s107_s19  ;;  %p113_p10 = scmp.lt.s32.totalorder %s107_s19, %s107_s19 }
  0x16   :  { %83 = vlog2.f32 %v47_v3 }
  0x17   :  { %p114_p11 = por %p113_p10, %p112_p9 }
  0x19   :  { %p115_p12 = pnand %p114_p11, %p108_p8 }
  0x1a   :  { %v51_v8 = vld [vmem:[#allocation2] sm:$0xff] }
  0x1f   :  { %v82_v4 = vpop.eup %81 }
  0x20   :  { %v84_v5 = vpop.eup %83  ;;  %v46_v6 = vmul.f32 0.6931472, %v82_v4 }
  0x21   :  { %v49_v7 = vmul.f32 0.6931472, %v84_v5 }
  0x23   :  { %v50_v9 = vsub.f32 %v46_v6, %v49_v7 }
  0x25   :  { %v53_v10 = vadd.f32 %v51_v8, %v50_v9 }
  0x27   :  { %55 = vst.msk [vmem:[#allocation2] sm:$0xff] %vm33_vm0, %v53_v10 }
  0x2e   :  { %v59_v11 = vld [vmem:[#allocation2] sm:$0xff] }
  0x2f   :  { %60 = vst.msk [vmem:[#allocation6] sm:$0xff] %vm33_vm0, %v59_v11 }
  0x30   :  { %118 = shalt.err (!%p115_p12)
}
  0x31   :  { %s119_s22 = scalar_lea.hbm %s174_s1, 128 }
  0x32   :  { %p120_p13 = scmp.ne.s32.totalorder %s174_s1, %s119_s22  ;;  %p123_p0 = scmp.lt.u32.totalorder %s119_s22, %s174_s1 }
  0x34   :  { %p125_p1 = pnand %p123_p0, %p120_p13 }
  0x36   :  { %128 = shalt.err (!%p125_p1)
}
  0x37   :  { %70 = dma.vmem_to_hbm [thread:$0]  %s68_s18, 128, %s174_s1, [#allocation5]  }
  0x38   :  { %131 = dma.done.wait [#allocation5], 128  }
  0x39   :  { %132 = vsyncadd [#allocation5], 4294967168 }
  0x3a   :  { %74 = vsyncpa [#allocation4], 1 }
  0x3b   :  { %75 = vsyncpa [#allocation5], 1 }

</bundles_post_ra>
